<compile_context>
chip_gen: v7x
topology: tpu7x:2x2x1
jax: 0.10.0
libtpu: 0.0.40
codegen_flags: <defaults>
</compile_context>

<pallas_src>
import math
import functools

import numpy as np
import jax
import jax.numpy as jnp
from jax.experimental import pallas as pl
from jax.experimental.pallas import tpu as pltpu


# ----------------------------------------------------------------------------
# Kernel 1: fused LayerNorm1 + QKV projection
# ----------------------------------------------------------------------------
def _ln_qkv_kernel(x_ref, g_ref, b_ref, w_ref, bq_ref, o_ref, *, eps):
    x = x_ref[...].astype(jnp.float32)                       # (rows, D)
    mu = jnp.mean(x, axis=-1, keepdims=True)
    var = jnp.mean((x - mu) ** 2, axis=-1, keepdims=True)
    xn = (x - mu) * jax.lax.rsqrt(var + eps) * g_ref[...] + b_ref[...]
    acc = jnp.dot(xn.astype(jnp.bfloat16), w_ref[...],       # bf16 x bf16 -> f32 (MXU)
                  preferred_element_type=jnp.float32)
    o_ref[...] = (acc + bq_ref[...]).astype(o_ref.dtype)


def ln_qkv_pallas(x2d, gamma, beta, w_bf16, b, *, block_rows, eps=1e-6):
    n, d = x2d.shape
    dout = w_bf16.shape[1]
    assert n % block_rows == 0
    return pl.pallas_call(
        functools.partial(_ln_qkv_kernel, eps=eps),
        out_shape=jax.ShapeDtypeStruct((n, dout), jnp.bfloat16),
        grid=(n // block_rows,),
        in_specs=[
            pl.BlockSpec((block_rows, d), lambda i: (i, 0)),
            pl.BlockSpec((1, d), lambda i: (0, 0)),
            pl.BlockSpec((1, d), lambda i: (0, 0)),
            pl.BlockSpec((d, dout), lambda i: (0, 0)),
            pl.BlockSpec((1, dout), lambda i: (0, 0)),
        ],
        out_specs=pl.BlockSpec((block_rows, dout), lambda i: (i, 0)),
        compiler_params=pltpu.CompilerParams(dimension_semantics=("parallel",)),
    )(x2d, gamma.reshape(1, d), beta.reshape(1, d), w_bf16, b.reshape(1, dout))


# ----------------------------------------------------------------------------
# Kernel 2: window attention on image-layout strips (no XLA window transposes)
#   grid = (B, hs), each step handles one (window, W) strip = ws windows, all heads.
# ----------------------------------------------------------------------------
def _strip_attn_kernel(qkv_ref, bias_ref, mask_ref, o_ref, tok_scr, *,
                       n_head, dim_head, window, ws, scale):
    # qkv_ref : (1, window, W, 3C)  bf16  (image-layout strip, lane-dense 3C)
    # bias_ref: (NH, T, T)          f32   (relative-position bias, shared by all windows)
    # mask_ref: (1, ws, T, T)       f32   (additive shift mask for this strip; 0 if no shift)
    # o_ref   : (1, window, W, C)   bf16  (written back in image layout)
    # tok_scr : (ws, T, 3C)         bf16  VMEM scratch (window-partitioned tokens)
    T = window * window
    C = n_head * dim_head

    # Window partition inside VMEM with plain slice copies (no HBM transpose).
    for j in range(ws):
        for r in range(window):
            tok_scr[j, r * window:(r + 1) * window, :] = \
                qkv_ref[0, r, j * window:(j + 1) * window, :]
    toks = tok_scr[...]                                      # (ws, T, 3C) bf16
    mask = mask_ref[0]                                       # (ws, T, T)  f32

    head_outs = []
    for h in range(n_head):                                  # NH small -> static unroll
        lo = h * dim_head
        q = toks[:, :, lo:lo + dim_head] * scale             # scale q, not the (T,T) scores
        k = toks[:, :, C + lo:C + lo + dim_head]
        v = toks[:, :, 2 * C + lo:2 * C + lo + dim_head]
        s = jnp.einsum('wtd,wsd->wts', q, k,
                       preferred_element_type=jnp.float32)   # (ws, T, T) f32, MXU
        s = s + bias_ref[h][None, :, :] + mask                # two cheap VPU adds
        m = jnp.max(s, axis=-1, keepdims=True)
        p = jnp.exp(s - m)
        l = jnp.sum(p, axis=-1, keepdims=True)
        attn = p * pl.reciprocal(l, approx=True)              # EUP reciprocal
        head_outs.append(
            jnp.einsum('wts,wsd->wtd', attn.astype(jnp.bfloat16), v,
                       preferred_element_type=jnp.float32).astype(jnp.bfloat16))
    out = jnp.concatenate(head_outs, axis=-1)                 # (ws, T, C) bf16

    # Inverse window partition: write straight back in image layout (lane-dense C).
    for j in range(ws):
        for r in range(window):
            o_ref[0, r, j * window:(j + 1) * window, :] = \
                out[j, r * window:(r + 1) * window, :]


def window_attention_pallas(qkv_img, rel_bias, mask_add, *, n_head, dim_head, window):
    B, H, W, threeC = qkv_img.shape
    C = n_head * dim_head
    assert threeC == 3 * C
    hs, ws = H // window, W // window
    T = window * window
    return pl.pallas_call(
        functools.partial(_strip_attn_kernel, n_head=n_head, dim_head=dim_head,
                          window=window, ws=ws, scale=1.0 / math.sqrt(dim_head)),
        out_shape=jax.ShapeDtypeStruct((B, H, W, C), jnp.bfloat16),
        grid=(B, hs),
        in_specs=[
            pl.BlockSpec((1, window, W, threeC), lambda b, i: (b, i, 0, 0)),
            pl.BlockSpec((n_head, T, T), lambda b, i: (0, 0, 0)),
            pl.BlockSpec((1, ws, T, T), lambda b, i: (i, 0, 0, 0)),
        ],
        out_specs=pl.BlockSpec((1, window, W, C), lambda b, i: (b, i, 0, 0)),
        scratch_shapes=[pltpu.VMEM((ws, T, 3 * C), jnp.bfloat16)],
        compiler_params=pltpu.CompilerParams(
            dimension_semantics=("parallel", "parallel")),
    )(qkv_img, rel_bias, mask_add)


# ----------------------------------------------------------------------------
# Kernel 3: out-projection + residual + LayerNorm2 + FFN(SiLU) + residual
# ----------------------------------------------------------------------------
def _proj_ffn_kernel(a_ref, x_ref, wo_ref, bo_ref, g2_ref, be2_ref,
                     w1_ref, b1_ref, w2_ref, b2_ref, o_ref, *, eps):
    a = a_ref[...]                                           # (rows, C) bf16
    x = x_ref[...].astype(jnp.float32)                       # (rows, D) (bf16 residual stream)
    proj = jnp.dot(a, wo_ref[...], preferred_element_type=jnp.float32) + bo_ref[...]
    h1 = x + proj                                            # residual 1
    mu = jnp.mean(h1, axis=-1, keepdims=True)
    var = jnp.mean((h1 - mu) ** 2, axis=-1, keepdims=True)
    xn = (h1 - mu) * jax.lax.rsqrt(var + eps) * g2_ref[...] + be2_ref[...]
    h = jnp.dot(xn.astype(jnp.bfloat16), w1_ref[...],
                preferred_element_type=jnp.float32) + b1_ref[...]
    h = h * jax.nn.sigmoid(h)                                # SiLU in f32
    o = jnp.dot(h.astype(jnp.bfloat16), w2_ref[...],
                preferred_element_type=jnp.float32) + b2_ref[...]
    o_ref[...] = (h1 + o).astype(o_ref.dtype)                # residual 2


def proj_ffn_pallas(attn2d, x2d, wo_bf, bo, g2, be2, w1_bf, b1, w2_bf, b2,
                    *, block_rows, eps=1e-6):
    n, c = attn2d.shape
    d = x2d.shape[1]
    dff = w1_bf.shape[1]
    assert n % block_rows == 0
    return pl.pallas_call(
        functools.partial(_proj_ffn_kernel, eps=eps),
        out_shape=jax.ShapeDtypeStruct((n, d), jnp.bfloat16),
        grid=(n // block_rows,),
        in_specs=[
            pl.BlockSpec((block_rows, c), lambda i: (i, 0)),
            pl.BlockSpec((block_rows, d), lambda i: (i, 0)),
            pl.BlockSpec((c, d), lambda i: (0, 0)),
            pl.BlockSpec((1, d), lambda i: (0, 0)),
            pl.BlockSpec((1, d), lambda i: (0, 0)),
            pl.BlockSpec((1, d), lambda i: (0, 0)),
            pl.BlockSpec((d, dff), lambda i: (0, 0)),
            pl.BlockSpec((1, dff), lambda i: (0, 0)),
            pl.BlockSpec((dff, d), lambda i: (0, 0)),
            pl.BlockSpec((1, d), lambda i: (0, 0)),
        ],
        out_specs=pl.BlockSpec((block_rows, d), lambda i: (i, 0)),
        compiler_params=pltpu.CompilerParams(dimension_semantics=("parallel",)),
    )(attn2d, x2d, wo_bf, bo.reshape(1, d), g2.reshape(1, d), be2.reshape(1, d),
      w1_bf, b1.reshape(1, dff), w2_bf, b2.reshape(1, d))


def _pick_block_rows(n, max_rows=512):
    # Prefer the largest divisor of n that is a multiple of 16 (bf16 sublane packing);
    # do NOT force >=2 grid steps (single-TC chips run the grid as a serial loop).
    for cand in range(min(max_rows, n), 15, -1):
        if n % cand == 0 and cand % 16 == 0:
            return cand
    for cand in range(min(max_rows, n), 7, -1):
        if n % cand == 0 and cand % 8 == 0:
            return cand
    return n


# ----------------------------------------------------------------------------
# Static mask / relative-position construction (numpy port of make_mask_pos)
# ----------------------------------------------------------------------------
def make_mask_pos(input_size, window, shift):
    h, w = input_size
    hs, ws = h // window, w // window
    yy, xx = np.meshgrid(np.arange(window * hs), np.arange(window * ws),
                         indexing='ij')
    if shift:
        roll = -(window // 2)
        yy = np.roll(yy, (roll, roll), axis=(0, 1))
        xx = np.roll(xx, (roll, roll), axis=(0, 1))
    y_c = yy.reshape(hs, window, ws, window).transpose(0, 2, 1, 3).reshape(-1, window, window)
    x_c = xx.reshape(hs, window, ws, window).transpose(0, 2, 1, 3).reshape(-1, window, window)
    x_ct = np.swapaxes(x_c, 1, 2)
    x_diff = np.swapaxes(x_ct[:, None] - x_ct[:, :, None], 2, 3)
    x_flag = np.abs(x_diff) < window
    y_diff = y_c[:, None] - y_c[:, :, None]
    y_flag = np.abs(y_diff) < window
    x_diff = x_diff[:, None]
    y_diff = y_diff[:, :, None]
    if shift:
        local_mask = x_flag[:, None] & y_flag[:, :, None]
        x_diff = x_diff * local_mask
        y_diff = y_diff * local_mask
    else:
        local_mask = None
        nw = x_diff.shape[0]
        x_diff = np.broadcast_to(x_diff, (nw, window, window, window, window))
        y_diff = np.broadcast_to(y_diff, (nw, window, window, window, window))
    return y_diff + (window - 1), x_diff + (window - 1), local_mask


# ----------------------------------------------------------------------------
# Full TransformerLayer forward (Pallas) and pure-JAX reference
# ----------------------------------------------------------------------------
def transformer_layer_pallas(x, params, consts, cfg):
    B, H, W, D = x.shape
    window, nh, dh, shift = cfg['window'], cfg['n_head'], cfg['dim_head'], cfg['shift']
    C = nh * dh
    N = B * H * W
    roll = -(window // 2)
    block_rows = _pick_block_rows(N)

    # bf16 weights for the MXU; biases / LayerNorm params stay f32.
    w_qkv_bf = params['w_qkv'].astype(jnp.bfloat16)
    w_out_bf = params['w_out'].astype(jnp.bfloat16)
    w1_bf = params['w1'].astype(jnp.bfloat16)
    w2_bf = params['w2'].astype(jnp.bfloat16)

    # Residual stream carried in bf16 (halves HBM traffic for the x reads / y write).
    x_bf = x.astype(jnp.bfloat16)

    # ---- attention branch ----
    # roll(LN(x)) == LN(roll(x)) (LayerNorm is per-pixel); roll first so kernels 1/2
    # consume already-shifted rows.
    x_attn = jnp.roll(x_bf, (roll, roll), axis=(1, 2)) if shift else x_bf
    qkv = ln_qkv_pallas(x_attn.reshape(N, D), params['ln1_g'], params['ln1_b'],
                        w_qkv_bf, params['b_qkv'], block_rows=block_rows)   # (N, 3C) bf16
    qkv_img = qkv.reshape(B, H, W, 3 * C)          # free reshape (raster order unchanged)

    # Kernel 2 reads / writes image layout directly; window partition happens in VMEM.
    attn_img = window_attention_pallas(qkv_img, consts['rel_bias'], consts['mask_add'],
                                       n_head=nh, dim_head=dh, window=window)  # (B,H,W,C) bf16
    if shift:
        # linear(roll(a)) == roll(linear(a)): un-roll before the fused projection kernel.
        attn_img = jnp.roll(attn_img, (-roll, -roll), axis=(1, 2))

    # ---- out-proj + residual + LN2 + FFN + residual (single fused kernel) ----
    y = proj_ffn_pallas(attn_img.reshape(N, C), x_bf.reshape(N, D),
                        w_out_bf, params['b_out'],
                        params['ln2_g'], params['ln2_b'],
                        w1_bf, params['b1'], w2_bf, params['b2'],
                        block_rows=block_rows)
    return y.reshape(B, H, W, D)


def transformer_layer_ref(x, params, consts, cfg):
    B, H, W, D = x.shape
    window, nh, dh, shift = cfg['window'], cfg['n_head'], cfg['dim_head'], cfg['shift']
    hs, ws = H // window, W // window
    T = window * window
    C = nh * dh
    roll = -(window // 2)

    def ln(t, g, b):
        mu = jnp.mean(t, -1, keepdims=True)
        var = jnp.mean((t - mu) ** 2, -1, keepdims=True)
        return (t - mu) / jnp.sqrt(var + 1e-6) * g + b

    def win_reshape(t):
        t = t.reshape(B, hs, window, ws, window, nh, dh)
        return t.transpose(0, 1, 3, 5, 2, 4, 6).reshape(B, hs * ws, nh, T, dh)

    xn = ln(x, params['ln1_g'], params['ln1_b'])
    if shift:
        xn = jnp.roll(xn, (roll, roll), axis=(1, 2))
    qkv = xn @ params['w_qkv'] + params['b_qkv']
    q, k, v = qkv[..., :C], qkv[..., C:2 * C], qkv[..., 2 * C:]
    q, k, v = win_reshape(q), win_reshape(k), win_reshape(v)
    score = jnp.einsum('bwhtd,bwhsd->bwhts', q, k) / math.sqrt(dh)
    score = score + consts['rel_bias'][None, None]
    if shift:
        score = jnp.where(consts['mask'][None, :, None] > 0.5, -jnp.inf, score)
    attn = jax.nn.softmax(score, axis=-1)
    out = jnp.einsum('bwhts,bwhsd->bwhtd', attn, v)
    out = out.reshape(B, hs, ws, nh, window, window, dh)
    out = out.transpose(0, 1, 4, 2, 5, 3, 6).reshape(B, H, W, C)
    out = out @ params['w_out'] + params['b_out']
    if shift:
        out = jnp.roll(out, (-roll, -roll), axis=(1, 2))
    x = x + out
    xn2 = ln(x, params['ln2_g'], params['ln2_b'])
    h = xn2 @ params['w1'] + params['b1']
    h = h * jax.nn.sigmoid(h)
    return x + (h @ params['w2'] + params['b2'])


# ----------------------------------------------------------------------------
# Main
# ----------------------------------------------------------------------------
if __name__ == "__main__":
    B, H, W = 2, 8, 8
    dim, n_head, dim_head, dim_ff = 32, 2, 16, 64
    window, shift = 4, True
    T = window * window
    hs, ws = H // window, W // window
    NW = hs * ws
    cfg = dict(window=window, n_head=n_head, dim_head=dim_head,
               dim_ff=dim_ff, shift=shift)

    keys = jax.random.split(jax.random.PRNGKey(0), 16)

    def init(key, shape, scale=0.05):
        return (scale * jax.random.normal(key, shape)).astype(jnp.float32)

    C = n_head * dim_head
    params = {
        'ln1_g': jnp.ones((dim,), jnp.float32) + init(keys[0], (dim,)),
        'ln1_b': init(keys[1], (dim,)),
        'w_qkv': init(keys[2], (dim, 3 * C)),
        'b_qkv': init(keys[3], (3 * C,)),
        'w_out': init(keys[4], (C, dim)),
        'b_out': init(keys[5], (dim,)),
        'ln2_g': jnp.ones((dim,), jnp.float32) + init(keys[6], (dim,)),
        'ln2_b': init(keys[7], (dim,)),
        'w1': init(keys[8], (dim, dim_ff)),
        'b1': init(keys[9], (dim_ff,)),
        'w2': init(keys[10], (dim_ff, dim)),
        'b2': init(keys[11], (dim,)),
    }
    # NOTE: nn.Embedding rel_pos is zero-initialized in the PyTorch __init__;
    # small random values here so the bias-add path is exercised.
    rel_table = init(keys[12], ((2 * window - 1) ** 2, n_head), scale=0.02)

    y_pos, x_pos, local_mask = make_mask_pos((H, W), window, shift)
    pos = (y_pos * (2 * window - 1) + x_pos)[0].reshape(T, T)
    rel_bias = jnp.transpose(rel_table[jnp.asarray(pos)], (2, 0, 1))   # (NH, T, T) f32
    if shift:
        mask_f = jnp.asarray(np.logical_not(local_mask).reshape(-1, T, T),
                             jnp.float32)                               # (NW, T, T)
    else:
        mask_f = jnp.zeros((NW, T, T), jnp.float32)
    # Additive shift mask for the Pallas kernel, kept separate from rel_bias:
    # (hs, ws, T, T) f32 with -1e30 at masked slots (no per-element select, no -inf NaNs).
    mask_add = jnp.where(mask_f > 0.5, -1e30, 0.0).reshape(hs, ws, T, T)
    consts = {'rel_bias': rel_bias, 'mask': mask_f, 'mask_add': mask_add}

    x = jax.random.normal(keys[13], (B, H, W, dim), jnp.float32)

    out_pallas = jax.block_until_ready(transformer_layer_pallas(x, params, consts, cfg))
    out_ref = jax.block_until_ready(transformer_layer_ref(x, params, consts, cfg))

    # Pallas path uses a bf16 residual stream + bf16 MXU operands (f32 accumulation),
    # so compare at a bf16-appropriate tolerance against the pure-f32 reference.
    np.testing.assert_allclose(np.asarray(out_pallas.astype(jnp.float32)),
                               np.asarray(out_ref),
                               rtol=3e-2, atol=3e-2)
    print("KERNEL_OK")
</pallas_src>

<mosaic_0001>
module attributes {stable_mosaic.version = 11 : i64} {
  func.func @_ln_qkv_kernel(%arg0: i32, %arg1: memref<128x32xbf16, #tpu.memory_space<vmem>>, %arg2: memref<1x32xf32, #tpu.memory_space<vmem>>, %arg3: memref<1x32xf32, #tpu.memory_space<vmem>>, %arg4: memref<32x96xbf16, #tpu.memory_space<vmem>>, %arg5: memref<1x96xf32, #tpu.memory_space<vmem>>, %arg6: memref<128x96xbf16, #tpu.memory_space<vmem>>) attributes {dimension_semantics = [#tpu.dimension_semantics<parallel>], iteration_bounds = array<i64: 1>, scalar_prefetch = 0 : i64, scratch_operands = 0 : i64, tpu.core_type = #tpu.core_type<tc>, window_params = [{transform_indices = @transform_0, window_bounds = array<i64: 128, 32>}, {pipeline_mode = #tpu.pipeline_mode<synchronous>, transform_indices = @transform_1, window_bounds = array<i64: 1, 32>}, {pipeline_mode = #tpu.pipeline_mode<synchronous>, transform_indices = @transform_2, window_bounds = array<i64: 1, 32>}, {pipeline_mode = #tpu.pipeline_mode<synchronous>, transform_indices = @transform_3, window_bounds = array<i64: 32, 96>}, {pipeline_mode = #tpu.pipeline_mode<synchronous>, transform_indices = @transform_4, window_bounds = array<i64: 1, 96>}, {transform_indices = @transform_5, window_bounds = array<i64: 128, 96>}]} {
    %c0 = arith.constant 0 : index
    %c0_0 = arith.constant 0 : index
    %0 = vector.load %arg1[%c0, %c0_0] : memref<128x32xbf16, #tpu.memory_space<vmem>>, vector<128x32xbf16>
    %1 = arith.extf %0 : vector<128x32xbf16> to vector<128x32xf32>
    %cst = arith.constant dense<0.000000e+00> : vector<128xf32>
    %2 = vector.multi_reduction <add>, %1, %cst [1] : vector<128x32xf32> to vector<128xf32>
    %3 = vector.shape_cast %2 : vector<128xf32> to vector<128x1xf32>
    %cst_1 = arith.constant 3.200000e+01 : f32
    %4 = vector.broadcast %cst_1 : f32 to vector<128x1xf32>
    %5 = arith.divf %3, %4 : vector<128x1xf32>
    %6 = vector.broadcast %5 : vector<128x1xf32> to vector<128x32xf32>
    %7 = arith.subf %1, %6 : vector<128x32xf32>
    %8 = arith.mulf %7, %7 : vector<128x32xf32>
    %cst_2 = arith.constant dense<0.000000e+00> : vector<128xf32>
    %9 = vector.multi_reduction <add>, %8, %cst_2 [1] : vector<128x32xf32> to vector<128xf32>
    %10 = vector.shape_cast %9 : vector<128xf32> to vector<128x1xf32>
    %cst_3 = arith.constant 3.200000e+01 : f32
    %11 = vector.broadcast %cst_3 : f32 to vector<128x1xf32>
    %12 = arith.divf %10, %11 : vector<128x1xf32>
    %13 = vector.broadcast %5 : vector<128x1xf32> to vector<128x32xf32>
    %14 = arith.subf %1, %13 : vector<128x32xf32>
    %cst_4 = arith.constant 9.99999997E-7 : f32
    %15 = vector.broadcast %cst_4 : f32 to vector<128x1xf32>
    %16 = arith.addf %12, %15 : vector<128x1xf32>
    %17 = math.rsqrt %16 : vector<128x1xf32>
    %18 = vector.broadcast %17 : vector<128x1xf32> to vector<128x32xf32>
    %19 = arith.mulf %14, %18 : vector<128x32xf32>
    %c0_5 = arith.constant 0 : index
    %c0_6 = arith.constant 0 : index
    %20 = vector.load %arg2[%c0_5, %c0_6] : memref<1x32xf32, #tpu.memory_space<vmem>>, vector<1x32xf32>
    %21 = vector.broadcast %20 : vector<1x32xf32> to vector<128x32xf32>
    %22 = arith.mulf %19, %21 : vector<128x32xf32>
    %c0_7 = arith.constant 0 : index
    %c0_8 = arith.constant 0 : index
    %23 = vector.load %arg3[%c0_7, %c0_8] : memref<1x32xf32, #tpu.memory_space<vmem>>, vector<1x32xf32>
    %24 = vector.broadcast %23 : vector<1x32xf32> to vector<128x32xf32>
    %25 = arith.addf %22, %24 : vector<128x32xf32>
    %26 = arith.truncf %25 : vector<128x32xf32> to vector<128x32xbf16>
    %c0_9 = arith.constant 0 : index
    %c0_10 = arith.constant 0 : index
    %27 = vector.load %arg4[%c0_9, %c0_10] : memref<32x96xbf16, #tpu.memory_space<vmem>>, vector<32x96xbf16>
    %cst_11 = arith.constant dense<0.000000e+00> : vector<128x96xf32>
    %28 = tpu.matmul %26, %27, %cst_11 {dimension_numbers = #tpu.dot_dimension_numbers<[1], [0], [0], [1], [0, 0, 1, 1], [], []>} : vector<128x32xbf16>, vector<32x96xbf16>, vector<128x96xf32> -> vector<128x96xf32>
    %c0_12 = arith.constant 0 : index
    %c0_13 = arith.constant 0 : index
    %29 = vector.load %arg5[%c0_12, %c0_13] : memref<1x96xf32, #tpu.memory_space<vmem>>, vector<1x96xf32>
    %30 = vector.broadcast %29 : vector<1x96xf32> to vector<128x96xf32>
    %31 = arith.addf %28, %30 : vector<128x96xf32>
    %32 = arith.truncf %31 : vector<128x96xf32> to vector<128x96xbf16>
    %c0_14 = arith.constant 0 : index
    %c0_15 = arith.constant 0 : index
    %33 = vector.load %arg6[%c0_14, %c0_15] : memref<128x96xbf16, #tpu.memory_space<vmem>>, vector<128x96xbf16>
    tpu.vector_store %arg6[%c0_14, %c0_15], %32 {strides = array<i32>} : memref<128x96xbf16, #tpu.memory_space<vmem>>, vector<128x96xbf16>,
    return
  }
  func.func @transform_0(%arg0: i32) -> (i32, i32) {
    %c0_i32 = arith.constant 0 : i32
    %c0_i32_0 = arith.constant 0 : i32
    return %arg0, %c0_i32 : i32, i32
  }
  func.func @transform_1(%arg0: i32) -> (i32, i32) {
    %c0_i32 = arith.constant 0 : i32
    %c0_i32_0 = arith.constant 0 : i32
    %c0_i32_1 = arith.constant 0 : i32
    return %c0_i32, %c0_i32_0 : i32, i32
  }
  func.func @transform_2(%arg0: i32) -> (i32, i32) {
    %c0_i32 = arith.constant 0 : i32
    %c0_i32_0 = arith.constant 0 : i32
    %c0_i32_1 = arith.constant 0 : i32
    return %c0_i32, %c0_i32_0 : i32, i32
  }
  func.func @transform_3(%arg0: i32) -> (i32, i32) {
    %c0_i32 = arith.constant 0 : i32
    %c0_i32_0 = arith.constant 0 : i32
    %c0_i32_1 = arith.constant 0 : i32
    return %c0_i32, %c0_i32_0 : i32, i32
  }
  func.func @transform_4(%arg0: i32) -> (i32, i32) {
    %c0_i32 = arith.constant 0 : i32
    %c0_i32_0 = arith.constant 0 : i32
    %c0_i32_1 = arith.constant 0 : i32
    return %c0_i32, %c0_i32_0 : i32, i32
  }
  func.func @transform_5(%arg0: i32) -> (i32, i32) {
    %c0_i32 = arith.constant 0 : i32
    %c0_i32_0 = arith.constant 0 : i32
    return %arg0, %c0_i32 : i32, i32
  }
}

</mosaic_0001>

<bundles_post_ra>
// kernel: tpu_custom_call.1
= control target key start
LH: loop header
LB: loop body
LE: loop exit
PB: predicated region body
PF: predicated region fallthrough
CT: control target
= control target key end

     0   :  { %vm53_vm0 = vcmask 261120   ;;  %vm525_vm1 = vcmask 781312   ;;  %s1075_s0 = inlined_call_operand.vmem [shape: bf16[128,32], index: 0, kind: input, shape index: {}]   ;;  %s1076_s3 = inlined_call_operand.vmem [shape: bf16[32,96], index: 3, kind: input, shape index: {}]   ;;  %s1077_s1 = inlined_call_operand.vmem [shape: f32[1,32], index: 1, kind: input, shape index: {}]   ;;  %s1078_s2 = inlined_call_operand.vmem [shape: f32[1,32], index: 2, kind: input, shape index: {}]   ;;  %s1079_s4 = inlined_call_operand.vmem [shape: f32[1,96], index: 4, kind: input, shape index: {}]   ;;  %s1080_s5 = inlined_call_operand.vmem [shape: bf16[128,96], index: 5, kind: output, shape index: {}]  }
   0x1   :  { %v731_v0 = vld [vmem:[%s1075_s0] sm:$0xff]   ;;  %v745_v6 = vld [vmem:[%s1075_s0 + $0x8] sm:$0xff]   ;;  %v773_v18 = vld [vmem:[%s1075_s0 + $0x10] sm:$0xff]  }
   0x2   :  { %v736_v1 = vld [vmem:[%s1075_s0 + $0x20] sm:$0xff]   ;;  %v593_v2 = vunpack.c.l.bf16 %v731_v0  ;;  %v594_v4 = vunpack.c.h.bf16 %v731_v0  ;;  %v597_v11 = vunpack.c.l.bf16 %v745_v6  ;;  %v598_v12 = vunpack.c.h.bf16 %v745_v6  ;;  %v760_v13 = vld [vmem:[%s1075_s0 + $0x28] sm:$0xff]   ;;  %v786_v23 = vld [vmem:[%s1075_s0 + $0x30] sm:$0xff]  }
   0x3   :  { %v609_v3 = vunpack.c.l.bf16 %v736_v1  ;;  %v610_v5 = vunpack.c.h.bf16 %v736_v1  ;;  %v613_v16 = vunpack.c.l.bf16 %v760_v13  ;;  %v614_v17 = vunpack.c.h.bf16 %v760_v13  ;;  %v799_v28 = vld [vmem:[%s1075_s0 + $0x18] sm:$0xff]  }
   0x4   :  { %v54_v7 = vsel %vm53_vm0, %v593_v2, 0.0  ;;  %v57_v9 = vsel %vm53_vm0, %v594_v4, 0.0  ;;  %v60_v14 = vsel %vm53_vm0, %v597_v11, 0.0  ;;  %v63_v15 = vsel %vm53_vm0, %v598_v12, 0.0  ;;  %v812_v33 = vld [vmem:[%s1075_s0 + $0x38] sm:$0xff]  }
   0x5   :  { %v78_v8 = vsel %vm53_vm0, %v609_v3, 0.0  ;;  %55 = vadd.xlane.f32.xlu0 %v54_v7  ;;  %v81_v10 = vsel %vm53_vm0, %v610_v5, 0.0  ;;  %v84_v19 = vsel %vm53_vm0, %v613_v16, 0.0  ;;  %v87_v20 = vsel %vm53_vm0, %v614_v17, 0.0 }
   0x6   :  { %79 = vadd.xlane.f32.xlu1 %v78_v8  ;;  %v601_v21 = vunpack.c.l.bf16 %v773_v18  ;;  %v602_v22 = vunpack.c.h.bf16 %v773_v18  ;;  %v617_v26 = vunpack.c.l.bf16 %v786_v23  ;;  %v618_v27 = vunpack.c.h.bf16 %v786_v23 }
   0x7   :  { %v605_v31 = vunpack.c.l.bf16 %v799_v28  ;;  %v606_v32 = vunpack.c.h.bf16 %v799_v28  ;;  %v621_v36 = vunpack.c.l.bf16 %v812_v33  ;;  %v622_v37 = vunpack.c.h.bf16 %v812_v33 }
   0x8   :  { %v66_v24 = vsel %vm53_vm0, %v601_v21, 0.0  ;;  %v69_v25 = vsel %vm53_vm0, %v602_v22, 0.0  ;;  %v90_v29 = vsel %vm53_vm0, %v617_v26, 0.0  ;;  %v93_v30 = vsel %vm53_vm0, %v618_v27, 0.0 }
   0x9   :  { %58 = vadd.xlane.f32.xlu0 %v57_v9  ;;  %v72_v34 = vsel %vm53_vm0, %v605_v31, 0.0  ;;  %v75_v35 = vsel %vm53_vm0, %v606_v32, 0.0  ;;  %v96_v38 = vsel %vm53_vm0, %v621_v36, 0.0  ;;  %v99_v39 = vsel %vm53_vm0, %v622_v37, 0.0 }
   0xa   :  { %82 = vadd.xlane.f32.xlu1 %v81_v10 }
   0xd   :  { %61 = vadd.xlane.f32.xlu0 %v60_v14 }
   0xe   :  { %64 = vadd.xlane.f32.xlu1 %v63_v15 }
  0x11   :  { %85 = vadd.xlane.f32.xlu0 %v84_v19 }
  0x12   :  { %88 = vadd.xlane.f32.xlu1 %v87_v20 }
  0x15   :  { %67 = vadd.xlane.f32.xlu0 %v66_v24 }
  0x16   :  { %70 = vadd.xlane.f32.xlu1 %v69_v25 }
  0x19   :  { %91 = vadd.xlane.f32.xlu0 %v90_v29 }
  0x1a   :  { %94 = vadd.xlane.f32.xlu1 %v93_v30 }
  0x1d   :  { %73 = vadd.xlane.f32.xlu0 %v72_v34 }
  0x1e   :  { %76 = vadd.xlane.f32.xlu1 %v75_v35 }
  0x21   :  { %97 = vadd.xlane.f32.xlu0 %v96_v38 }
  0x22   :  { %100 = vadd.xlane.f32.xlu1 %v99_v39 }
  0x92   :  { %v56_v40 = vpop.xlane.xlu0 %55 }
  0x93   :  { %v80_v41 = vpop.xlane.xlu1 %79  ;;  %v103_v42 = vmul.f32 0.03125, %v56_v40 }
  0x94   :  { %v111_v43 = vmul.f32 0.03125, %v80_v41 }
  0x95   :  { %v828_v44 = vsub.f32 %v593_v2, %v103_v42 }
  0x96   :  { %v830_v45 = vsub.f32 %v609_v3, %v111_v43  ;;  %v59_v46 = vpop.xlane.xlu0 %58 }
  0x97   :  { %v83_v47 = vpop.xlane.xlu1 %82  ;;  %v104_v48 = vmul.f32 0.03125, %v59_v46  ;;  %v135_v50 = vmul.f32 %v828_v44, %v828_v44 }
  0x98   :  { %v112_v49 = vmul.f32 0.03125, %v83_v47  ;;  %v143_v51 = vmul.f32 %v830_v45, %v830_v45 }
  0x99   :  { %v838_v52 = vsub.f32 %v594_v4, %v104_v48  ;;  %v151_v54 = vsel %vm53_vm0, %v135_v50, 0.0 }
  0x9a   :  { %v842_v53 = vsub.f32 %v610_v5, %v112_v49  ;;  %152 = vadd.xlane.f32.xlu0 %v151_v54  ;;  %v62_v55 = vpop.xlane.xlu0 %61  ;;  %v175_v57 = vsel %vm53_vm0, %v143_v51, 0.0 }
  0x9b   :  { %v65_v56 = vpop.xlane.xlu1 %64  ;;  %v105_v58 = vmul.f32 0.03125, %v62_v55  ;;  %v136_v60 = vmul.f32 %v838_v52, %v838_v52 }
  0x9c   :  { %v106_v59 = vmul.f32 0.03125, %v65_v56  ;;  %v144_v61 = vmul.f32 %v842_v53, %v842_v53 }
  0x9d   :  { %v852_v62 = vsub.f32 %v597_v11, %v105_v58  ;;  %v154_v0 = vsel %vm53_vm0, %v136_v60, 0.0 }
  0x9e   :  { %v856_v63 = vsub.f32 %v598_v12, %v106_v59  ;;  %176 = vadd.xlane.f32.xlu0 %v175_v57  ;;  %155 = vadd.xlane.f32.xlu1 %v154_v0  ;;  %v86_v1 = vpop.xlane.xlu0 %85  ;;  %v178_v3 = vsel %vm53_vm0, %v144_v61, 0.0 }
  0x9f   :  { %v89_v2 = vpop.xlane.xlu1 %88  ;;  %v113_v4 = vmul.f32 0.03125, %v86_v1  ;;  %v137_v7 = vmul.f32 %v852_v62, %v852_v62 }
  0xa0   :  { %v114_v5 = vmul.f32 0.03125, %v89_v2  ;;  %v138_v8 = vmul.f32 %v856_v63, %v856_v63 }
  0xa1   :  { %v866_v6 = vsub.f32 %v613_v16, %v113_v4  ;;  %v157_v10 = vsel %vm53_vm0, %v137_v7, 0.0 }
  0xa2   :  { %v870_v9 = vsub.f32 %v614_v17, %v114_v5  ;;  %179 = vadd.xlane.f32.xlu1 %v178_v3  ;;  %158 = vadd.xlane.f32.xlu0 %v157_v10  ;;  %v68_v11 = vpop.xlane.xlu0 %67  ;;  %v160_v14 = vsel %vm53_vm0, %v138_v8, 0.0 }
  0xa3   :  { %v71_v12 = vpop.xlane.xlu1 %70  ;;  %v107_v15 = vmul.f32 0.03125, %v68_v11  ;;  %v145_v20 = vmul.f32 %v866_v6, %v866_v6 }
  0xa4   :  { %v108_v19 = vmul.f32 0.03125, %v71_v12  ;;  %v146_v16 = vmul.f32 %v870_v9, %v870_v9 }
  0xa5   :  { %v880_v13 = vsub.f32 %v601_v21, %v107_v15  ;;  %v181_v24 = vsel %vm53_vm0, %v145_v20, 0.0 }
  0xa6   :  { %v884_v17 = vsub.f32 %v602_v22, %v108_v19  ;;  %161 = vadd.xlane.f32.xlu1 %v160_v14  ;;  %182 = vadd.xlane.f32.xlu0 %v181_v24  ;;  %v92_v25 = vpop.xlane.xlu0 %91  ;;  %v184_v30 = vsel %vm53_vm0, %v146_v16, 0.0 }
  0xa7   :  { %v95_v29 = vpop.xlane.xlu1 %94  ;;  %v115_v34 = vmul.f32 0.03125, %v92_v25  ;;  %v139_v38 = vmul.f32 %v880_v13, %v880_v13 }
  0xa8   :  { %v116_v35 = vmul.f32 0.03125, %v95_v29  ;;  %v140_v21 = vmul.f32 %v884_v17, %v884_v17 }
  0xa9   :  { %v894_v18 = vsub.f32 %v617_v26, %v115_v34  ;;  %v163_v39 = vsel %vm53_vm0, %v139_v38, 0.0 }
  0xaa   :  { %v898_v22 = vsub.f32 %v618_v27, %v116_v35  ;;  %185 = vadd.xlane.f32.xlu1 %v184_v30  ;;  %164 = vadd.xlane.f32.xlu0 %v163_v39  ;;  %v74_v40 = vpop.xlane.xlu0 %73  ;;  %v166_v42 = vsel %vm53_vm0, %v140_v21, 0.0 }
  0xab   :  { %v77_v41 = vpop.xlane.xlu1 %76  ;;  %v109_v43 = vmul.f32 0.03125, %v74_v40  ;;  %v147_v47 = vmul.f32 %v894_v18, %v894_v18 }
  0xac   :  { %v110_v46 = vmul.f32 0.03125, %v77_v41  ;;  %v148_v26 = vmul.f32 %v898_v22, %v898_v22 }
  0xad   :  { %v908_v23 = vsub.f32 %v605_v31, %v109_v43  ;;  %v187_v48 = vsel %vm53_vm0, %v147_v47, 0.0 }
  0xae   :  { %v912_v27 = vsub.f32 %v606_v32, %v110_v46  ;;  %167 = vadd.xlane.f32.xlu1 %v166_v42  ;;  %188 = vadd.xlane.f32.xlu0 %v187_v48  ;;  %v98_v49 = vpop.xlane.xlu0 %97  ;;  %v190_v51 = vsel %vm53_vm0, %v148_v26, 0.0  ;;  %v946_v42 = vld [vmem:[%s1077_s1] ss:$0 sm:$0xff] }
  0xaf   :  { %v101_v50 = vpop.xlane.xlu1 %100  ;;  %v117_v54 = vmul.f32 0.03125, %v98_v49  ;;  %v141_v56 = vmul.f32 %v908_v23, %v908_v23 }
  0xb0   :  { %v118_v55 = vmul.f32 0.03125, %v101_v50  ;;  %v142_v31 = vmul.f32 %v912_v27, %v912_v27 }
  0xb1   :  { %v922_v28 = vsub.f32 %v621_v36, %v117_v54  ;;  %v169_v57 = vsel %vm53_vm0, %v141_v56, 0.0  ;;  %v664_v36 = vld [vmem:[%s1076_s3] sm:$0xff]  }
  0xb2   :  { %v926_v32 = vsub.f32 %v622_v37, %v118_v55  ;;  %191 = vadd.xlane.f32.xlu1 %v190_v51  ;;  %170 = vadd.xlane.f32.xlu0 %v169_v57  ;;  %v172_v58 = vsel %vm53_vm0, %v142_v31, 0.0  ;;  %v665_v37 = vld [vmem:[%s1076_s3 + $0x8] sm:$0xff]   ;;  %v953_v55 = vld [vmem:[%s1078_s2] ss:$0 sm:$0xff] }
  0xb3   :  { %v149_v59 = vmul.f32 %v922_v28, %v922_v28  ;;  %640 = vmatprep.subr.bf16.mxu0 %v664_v36  ;;  %660 = vmatprep.subr.bf16.mxu1 %v664_v36 }
  0xb4   :  { %v150_v60 = vmul.f32 %v926_v32, %v926_v32  ;;  %641 = vmatpush3.bf16.msra.mxu0 %v664_v36  ;;  %662 = vmatpush3.bf16.msra.mxu1 %v664_v36 }
  0xb5   :  { %v193_v61 = vsel %vm53_vm0, %v149_v59, 0.0  ;;  %642 = vmatprep.subr.bf16.mxu0 %v665_v37  ;;  %661 = vmatprep.subr.bf16.mxu1 %v665_v37 }
  0xb6   :  { %173 = vadd.xlane.f32.xlu1 %v172_v58  ;;  %194 = vadd.xlane.f32.xlu0 %v193_v61  ;;  %v196_v33 = vsel %vm53_vm0, %v150_v60, 0.0 }
  0xb8   :  { %643 = vmatpush3.bf16.msra.mxu0 %v665_v37  ;;  %663 = vmatpush3.bf16.msra.mxu1 %v665_v37 }
  0xba   :  { %197 = vadd.xlane.f32.xlu1 %v196_v33 }
 0x127   :  { %v153_v0 = vpop.xlane.xlu0 %152 }
 0x128   :  { %v199_v1 = vmul.f32 0.03125, %v153_v0 }
 0x12a   :  { %v215_v2 = vadd.f32 1e-06, %v199_v1 }
 0x12b   :  { %v156_v3 = vpop.xlane.xlu1 %155  ;;  %v177_v4 = vpop.xlane.xlu0 %176 }
 0x12c   :  { %666 = vrsqrt.f32 %v215_v2  ;;  %v200_v5 = vmul.f32 0.03125, %v156_v3  ;;  %v207_v7 = vmul.f32 0.03125, %v177_v4 }
 0x12e   :  { %v216_v8 = vadd.f32 1e-06, %v200_v5  ;;  %v223_v10 = vadd.f32 1e-06, %v207_v7 }
 0x12f   :  { %v180_v11 = vpop.xlane.xlu1 %179  ;;  %v159_v12 = vpop.xlane.xlu0 %158 }
 0x130   :  { %668 = vrsqrt.f32 %v216_v8  ;;  %v208_v14 = vmul.f32 0.03125, %v180_v11  ;;  %v201_v15 = vmul.f32 0.03125, %v159_v12 }
 0x131   :  { %670 = vrsqrt.f32 %v223_v10 }
 0x132   :  { %v224_v19 = vadd.f32 1e-06, %v208_v14  ;;  %v217_v20 = vadd.f32 1e-06, %v201_v15 }
 0x133   :  { %v162_v16 = vpop.xlane.xlu1 %161  ;;  %v183_v24 = vpop.xlane.xlu0 %182 }
 0x134   :  { %672 = vrsqrt.f32 %v224_v19  ;;  %v202_v25 = vmul.f32 0.03125, %v162_v16  ;;  %v209_v29 = vmul.f32 0.03125, %v183_v24 }
 0x135   :  { %674 = vrsqrt.f32 %v217_v20 }
 0x136   :  { %v667_v30 = vpop.eup %666  ;;  %v218_v34 = vadd.f32 1e-06, %v202_v25  ;;  %v225_v35 = vadd.f32 1e-06, %v209_v29 }
 0x137   :  { %v186_v38 = vpop.xlane.xlu1 %185  ;;  %v165_v21 = vpop.xlane.xlu0 %164  ;;  %v247_v39 = vmul.f32 %v667_v30, %v828_v44 }
 0x138   :  { %676 = vrsqrt.f32 %v218_v34  ;;  %v210_v40 = vmul.f32 0.03125, %v186_v38  ;;  %v203_v41 = vmul.f32 0.03125, %v165_v21 }
 0x139   :  { %678 = vrsqrt.f32 %v225_v35  ;;  %v270_v51 = vmul.f32 %v946_v42, %v247_v39 }
 0x13a   :  { %v669_v43 = vpop.eup %668  ;;  %v226_v46 = vadd.f32 1e-06, %v210_v40  ;;  %v219_v47 = vadd.f32 1e-06, %v203_v41 }
 0x13b   :  { %v671_v26 = vpop.eup %670  ;;  %v168_v48 = vpop.xlane.xlu1 %167  ;;  %v248_v50 = vmul.f32 %v669_v43, %v838_v52  ;;  %v293_v33 = vadd.f32 %v953_v55, %v270_v51 }
 0x13c   :  { %v189_v49 = vpop.xlane.xlu0 %188  ;;  %680 = vrsqrt.f32 %v226_v46  ;;  %v204_v44 = vmul.f32 0.03125, %v168_v48  ;;  %v255_v56 = vmul.f32 %v671_v26, %v830_v45 }
 0x13d   :  { %v211_v54 = vmul.f32 0.03125, %v189_v49  ;;  %682 = vrsqrt.f32 %v219_v47  ;;  %v271_v31 = vmul.f32 %v946_v42, %v248_v50 }
 0x13e   :  { %v673_v57 = vpop.eup %672  ;;  %v220_v58 = vadd.f32 1e-06, %v204_v44  ;;  %v278_v0 = vmul.f32 %v946_v42, %v255_v56 }
 0x13f   :  { %v227_v59 = vadd.f32 1e-06, %v211_v54  ;;  %v675_v60 = vpop.eup %674  ;;  %v192_v52 = vpop.xlane.xlu1 %191  ;;  %v294_v36 = vadd.f32 %v953_v55, %v271_v31  ;;  %v256_v37 = vmul.f32 %v673_v57, %v842_v53 }
 0x140   :  { %v171_v61 = vpop.xlane.xlu0 %170  ;;  %v249_v1 = vmul.f32 %v675_v60, %v852_v62  ;;  %684 = vrsqrt.f32 %v220_v58  ;;  %v212_v45 = vmul.f32 0.03125, %v192_v52  ;;  %v301_v14 = vadd.f32 %v953_v55, %v278_v0 }
 0x141   :  { %v205_v2 = vmul.f32 0.03125, %v171_v61  ;;  %686 = vrsqrt.f32 %v227_v59  ;;  %v309_v3 = vpack.c.bf16 %v294_v36, %v293_v33  ;;  %v279_v4 = vmul.f32 %v946_v42, %v256_v37 }
 0x142   :  { %v677_v5 = vpop.eup %676  ;;  %v228_v7 = vadd.f32 1e-06, %v212_v45  ;;  %v272_v15 = vmul.f32 %v946_v42, %v249_v1 }
 0x143   :  { %v221_v8 = vadd.f32 1e-06, %v205_v2  ;;  %v679_v10 = vpop.eup %678  ;;  %v250_v11 = vmul.f32 %v677_v5, %v856_v63  ;;  %v174_v12 = vpop.xlane.xlu1 %173  ;;  %644 = vmatprep.mubr.msk.bf16.mxu0 %vm53_vm0, %v309_v3  ;;  %v302_v62 = vadd.f32 %v953_v55, %v279_v4 }
 0x144   :  { %v195_v53 = vpop.xlane.xlu0 %194  ;;  %v257_v19 = vmul.f32 %v679_v10, %v866_v6  ;;  %688 = vrsqrt.f32 %v228_v7  ;;  %v206_v20 = vmul.f32 0.03125, %v174_v12  ;;  %v295_v21 = vadd.f32 %v953_v55, %v272_v15 }
 0x145   :  { %v213_v16 = vmul.f32 0.03125, %v195_v53  ;;  %690 = vrsqrt.f32 %v221_v8  ;;  %v313_v24 = vpack.c.bf16 %v302_v62, %v301_v14  ;;  %v273_v25 = vmul.f32 %v946_v42, %v250_v11 }
 0x146   :  { %v681_v63 = vpop.eup %680  ;;  %v222_v29 = vadd.f32 1e-06, %v206_v20  ;;  %v280_v39 = vmul.f32 %v946_v42, %v257_v19 }
 0x147   :  { %v229_v30 = vadd.f32 1e-06, %v213_v16  ;;  %v683_v34 = vpop.eup %682  ;;  %v258_v35 = vmul.f32 %v681_v63, %v870_v9  ;;  %v198_v38 = vpop.xlane.xlu1 %197  ;;  %652 = vmatprep.mubr.msk.bf16.mxu1 %vm53_vm0, %v313_v24  ;;  %v296_v6 = vadd.f32 %v953_v55, %v273_v25 }
 0x148   :  { %v251_v40 = vmul.f32 %v683_v34, %v880_v13  ;;  %692 = vrsqrt.f32 %v222_v29  ;;  %v214_v41 = vmul.f32 0.03125, %v198_v38  ;;  %v303_v49 = vadd.f32 %v953_v55, %v280_v39 }
 0x149   :  { %694 = vrsqrt.f32 %v229_v30  ;;  %v310_v43 = vpack.c.bf16 %v296_v6, %v295_v21  ;;  %v281_v46 = vmul.f32 %v946_v42, %v258_v35 }
 0x14a   :  { %v685_v47 = vpop.eup %684  ;;  %v230_v26 = vadd.f32 1e-06, %v214_v41  ;;  %v274_v51 = vmul.f32 %v946_v42, %v251_v40 }
 0x14b   :  { %v687_v9 = vpop.eup %686  ;;  %v252_v48 = vmul.f32 %v685_v47, %v884_v17  ;;  %645 = vmatmul.mubr.msk.bf16.vlgmr.msra.gmra.mrb[0].mxu0 %vm53_vm0, %v310_v43  ;;  %v304_v50 = vadd.f32 %v953_v55, %v281_v46 }
 0x14c   :  { %v259_v13 = vmul.f32 %v687_v9, %v894_v18  ;;  %696 = vrsqrt.f32 %v230_v26  ;;  %v297_v17 = vadd.f32 %v953_v55, %v274_v51 }
 0x14d   :  { %v314_v44 = vpack.c.bf16 %v304_v50, %v303_v49  ;;  %v275_v54 = vmul.f32 %v946_v42, %v252_v48 }
 0x14e   :  { %v689_v56 = vpop.eup %688  ;;  %v282_v59 = vmul.f32 %v946_v42, %v259_v13 }
 0x14f   :  { %v691_v31 = vpop.eup %690  ;;  %v260_v57 = vmul.f32 %v689_v56, %v898_v22  ;;  %653 = vmatmul.mubr.msk.bf16.vlgmr.msra.gmra.mrb[0].mxu1 %vm53_vm0, %v314_v44  ;;  %v298_v58 = vadd.f32 %v953_v55, %v275_v54 }
 0x150   :  { %v253_v60 = vmul.f32 %v691_v31, %v908_v23  ;;  %v305_v22 = vadd.f32 %v953_v55, %v282_v59 }
 0x151   :  { %v311_v52 = vpack.c.bf16 %v298_v58, %v297_v17  ;;  %v283_v18 = vmul.f32 %v946_v42, %v260_v57 }
 0x152   :  { %v693_v61 = vpop.eup %692  ;;  %v276_v0 = vmul.f32 %v946_v42, %v253_v60 }
 0x153   :  { %v695_v33 = vpop.eup %694  ;;  %v254_v36 = vmul.f32 %v693_v61, %v912_v27  ;;  %648 = vmatprep.mubr.msk.bf16.mxu0 %vm53_vm0, %v311_v52  ;;  %v306_v37 = vadd.f32 %v953_v55, %v283_v18 }
 0x154   :  { %v261_v1 = vmul.f32 %v695_v33, %v922_v28  ;;  %v299_v27 = vadd.f32 %v953_v55, %v276_v0 }
 0x155   :  { %v315_v45 = vpack.c.bf16 %v306_v37, %v305_v22  ;;  %v277_v23 = vmul.f32 %v946_v42, %v254_v36 }
 0x156   :  { %v697_v2 = vpop.eup %696  ;;  %v284_v5 = vmul.f32 %v946_v42, %v261_v1 }
 0x157   :  { %v262_v3 = vmul.f32 %v697_v2, %v926_v32  ;;  %656 = vmatprep.mubr.msk.bf16.mxu1 %vm53_vm0, %v315_v45  ;;  %v300_v4 = vadd.f32 %v953_v55, %v277_v23  ;;  %v548_v32 = vld [vmem:[%s1079_s4] ss:$0 sm:$0xff] }
 0x158   :  { %v307_v28 = vadd.f32 %v953_v55, %v284_v5 }
 0x159   :  { %v312_v7 = vpack.c.bf16 %v300_v4, %v299_v27  ;;  %v285_v8 = vmul.f32 %v946_v42, %v262_v3 }
 0x15b   :  { %649 = vmatmul.mubr.msk.bf16.gmra.mrb[4].mxu0 %vm53_vm0, %v312_v7  ;;  %v308_v10 = vadd.f32 %v953_v55, %v285_v8 }
 0x15d   :  { %v316_v11 = vpack.c.bf16 %v308_v10, %v307_v28 }
 0x15f   :  { %657 = vmatmul.mubr.msk.bf16.gmra.mrb[4].mxu1 %vm53_vm0, %v316_v11 }
 0x21e   :  { %v646_v12 = vpop.f32.mrb[0].mxu0 }
 0x21f   :  { %v407_v53 = vadd.f32 %v646_v12, %v548_v32  ;;  %v398_v14 = vpop.f32.mrb[1].mxu0 }
 0x220   :  { %v399_v62 = vadd.f32 %v548_v32, %v398_v14  ;;  %v647_v15 = vpop.f32.mrb[2].mxu0 }
 0x221   :  { %v577_v42 = vpack.c.bf16 %v407_v53, %v407_v53  ;;  %v410_v19 = vadd.f32 %v647_v15, %v548_v32  ;;  %v401_v20 = vpop.f32.mrb[3].mxu0 }
 0x222   :  { %v575_v16 = vpack.c.bf16 %v399_v62, %v399_v62  ;;  %v402_v24 = vadd.f32 %v548_v32, %v401_v20  ;;  %v654_v25 = vpop.f32.mrb[0].mxu1 }
 0x223   :  { %528 = vst.msk [vmem:[%s1080_s5 + $0x8] sm:$0xf] %vm525_vm1, %v577_v42  ;;  %v578_v55 = vpack.c.bf16 %v410_v19, %v410_v19  ;;  %v439_v63 = vadd.f32 %v654_v25, %v548_v32  ;;  %v430_v29 = vpop.f32.mrb[1].mxu1 }
 0x224   :  { %526 = vst.msk [vmem:[%s1080_s5] sm:$0xf] %vm525_vm1, %v575_v16  ;;  %v576_v30 = vpack.c.bf16 %v402_v24, %v402_v24  ;;  %v431_v34 = vadd.f32 %v548_v32, %v430_v29  ;;  %v655_v35 = vpop.f32.mrb[2].mxu1 }
 0x225   :  { %529 = vst.msk [vmem:[%s1080_s5 + $0xc] sm:$0xf] %vm525_vm1, %v578_v55  ;;  %v585_v38 = vpack.c.bf16 %v439_v63, %v439_v63  ;;  %v442_v21 = vadd.f32 %v655_v35, %v548_v32  ;;  %v433_v6 = vpop.f32.mrb[3].mxu1 }
 0x226   :  { %527 = vst.msk [vmem:[%s1080_s5 + $0x4] sm:$0xf] %vm525_vm1, %v576_v30  ;;  %v583_v39 = vpack.c.bf16 %v431_v34, %v431_v34  ;;  %v434_v40 = vadd.f32 %v548_v32, %v433_v6 }
 0x227   :  { %536 = vst.msk [vmem:[%s1080_s5 + $0x28] sm:$0xf] %vm525_vm1, %v585_v38  ;;  %v586_v41 = vpack.c.bf16 %v442_v21, %v442_v21 }
 0x228   :  { %534 = vst.msk [vmem:[%s1080_s5 + $0x20] sm:$0xf] %vm525_vm1, %v583_v39  ;;  %v584_v43 = vpack.c.bf16 %v434_v40, %v434_v40 }
 0x229   :  { %537 = vst.msk [vmem:[%s1080_s5 + $0x2c] sm:$0xf] %vm525_vm1, %v586_v41 }
 0x22a   :  { %535 = vst.msk [vmem:[%s1080_s5 + $0x24] sm:$0xf] %vm525_vm1, %v584_v43 }
 0x22e   :  { %v650_v46 = vpop.f32.mrb[4].mxu0 }
 0x22f   :  { %v423_v47 = vadd.f32 %v650_v46, %v548_v32  ;;  %v414_v26 = vpop.f32.mrb[5].mxu0 }
 0x230   :  { %v415_v9 = vadd.f32 %v548_v32, %v414_v26  ;;  %v651_v48 = vpop.f32.mrb[6].mxu0 }
 0x231   :  { %v581_v49 = vpack.c.bf16 %v423_v47, %v423_v47  ;;  %v426_v50 = vadd.f32 %v651_v48, %v548_v32  ;;  %v417_v51 = vpop.f32.mrb[7].mxu0 }
 0x232   :  { %v579_v13 = vpack.c.bf16 %v415_v9, %v415_v9  ;;  %v418_v44 = vadd.f32 %v548_v32, %v417_v51  ;;  %v658_v54 = vpop.f32.mrb[4].mxu1 }
 0x233   :  { %532 = vst.msk [vmem:[%s1080_s5 + $0x18] sm:$0xf] %vm525_vm1, %v581_v49  ;;  %v582_v56 = vpack.c.bf16 %v426_v50, %v426_v50  ;;  %v455_v31 = vadd.f32 %v658_v54, %v548_v32  ;;  %v446_v57 = vpop.f32.mrb[5].mxu1 }
 0x234   :  { %530 = vst.msk [vmem:[%s1080_s5 + $0x10] sm:$0xf] %vm525_vm1, %v579_v13  ;;  %v580_v17 = vpack.c.bf16 %v418_v44, %v418_v44  ;;  %v447_v58 = vadd.f32 %v548_v32, %v446_v57  ;;  %v659_v59 = vpop.f32.mrb[6].mxu1 }
 0x235   :  { %533 = vst.msk [vmem:[%s1080_s5 + $0x1c] sm:$0xf] %vm525_vm1, %v582_v56  ;;  %v589_v60 = vpack.c.bf16 %v455_v31, %v455_v31  ;;  %v458_v52 = vadd.f32 %v659_v59, %v548_v32  ;;  %v449_v18 = vpop.f32.mrb[7].mxu1 }
 0x236   :  { %531 = vst.msk [vmem:[%s1080_s5 + $0x14] sm:$0xf] %vm525_vm1, %v580_v17  ;;  %v587_v61 = vpack.c.bf16 %v447_v58, %v447_v58  ;;  %v450_v33 = vadd.f32 %v548_v32, %v449_v18 }
 0x237   :  { %540 = vst.msk [vmem:[%s1080_s5 + $0x38] sm:$0xf] %vm525_vm1, %v589_v60  ;;  %v590_v36 = vpack.c.bf16 %v458_v52, %v458_v52 }
 0x238   :  { %538 = vst.msk [vmem:[%s1080_s5 + $0x30] sm:$0xf] %vm525_vm1, %v587_v61  ;;  %v588_v22 = vpack.c.bf16 %v450_v33, %v450_v33 }
 0x239   :  { %541 = vst.msk [vmem:[%s1080_s5 + $0x3c] sm:$0xf] %vm525_vm1, %v590_v36 }
 0x23a   :  { %539 = vst.msk [vmem:[%s1080_s5 + $0x34] sm:$0xf] %vm525_vm1, %v588_v22 }

</bundles_post_ra>
